<compile_context>
chip_gen: v6e
topology: v6e:2x2x1
jax: 0.10.0
libtpu: 0.0.40
codegen_flags: <defaults>
</compile_context>

<pallas_src>
import functools

import numpy as np
import jax
import jax.numpy as jnp
from jax.experimental import pallas as pl
from jax.experimental.pallas import tpu as pltpu


def _round_up(n, m):
    return ((n + m - 1) // m) * m


def _recip(d):
    """EUP approximate reciprocal + one Newton-Raphson step (~24-bit)."""
    r = pl.reciprocal(d, approx=True)
    return r * (jnp.float32(2.0) - d * r)


def _atan2(y, x):
    """Single-reciprocal min/max atan2 (torch.angle convention atan2(0,0)=0).

    t = min(|y|,|x|) / max(|y|,|x|) in [0,1]; atan(t) via the A&S 4.4.49
    minimax polynomial (|err| < 1e-5); complement with pi/2 when |y|>|x|;
    quadrant fixed from the signs of x and y.  All math stays f32 (v5e has no
    bf16 VPU/EUP).  Note: for x<0 with y == -0.0 this returns +pi where
    torch.angle returns -pi (same unit phasor).
    """
    pi = jnp.float32(np.pi)
    half_pi = jnp.float32(np.pi / 2)
    ay = jnp.abs(y)
    ax = jnp.abs(x)
    hi = jnp.maximum(ay, ax)
    lo = jnp.minimum(ay, ax)
    safe_hi = jnp.where(hi == 0.0, jnp.float32(1.0), hi)
    t = lo * _recip(safe_hi)                       # t in [0, 1]
    z = t * t
    p = jnp.float32(0.0208351)
    p = p * z - jnp.float32(0.0851330)
    p = p * z + jnp.float32(0.1801410)
    p = p * z - jnp.float32(0.3302995)
    p = p * z + jnp.float32(0.9998660)
    a = p * t                                      # atan(t)
    a = jnp.where(ay > ax, half_pi - a, a)         # atan(|y| / |x|)
    a = jnp.where(x < 0.0, pi - a, a)              # quadrants II / III
    a = jnp.where(y < 0.0, -a, a)                  # lower half-plane
    return a                                       # (0,0) already maps to 0


def _fft2_phase_kernel(x_ref, op_ref, out_ref):
    # x_ref:  (TB, K)   flattened row-major images, f32 in VMEM
    # op_ref: (K, 2K)   [Re(F2) | Im(F2)] flattened 2-D DFT operator (bf16/f32)
    # out_ref:(TB, K)   phase, f32
    k = out_ref.shape[-1]
    x = x_ref[...].astype(op_ref.dtype)            # in-kernel cast (VPU, free-ish)
    # One lane-dense MXU matmul producing [f_re | f_im]; f32 accumulation.
    fr_fi = jnp.dot(x, op_ref[...], preferred_element_type=jnp.float32)
    f_re = fr_fi[:, :k]                            # lane-aligned slices (k % 128 == 0)
    f_im = fr_fi[:, k:]
    out_ref[...] = _atan2(f_im, f_re)


@functools.lru_cache(maxsize=None)
def _dft2_operator(H, W, dtype):
    """Flattened 2-D DFT operator: y_rows = x_rows @ kron(F_H, F_W), F = C - iS.

    Returns the (H*W, 2*H*W) concatenation [Re | Im] (both factors are
    symmetric, so no transpose is needed).  Cached per (H, W, dtype): the host
    np.kron / np.cos work and the host->device transfer happen once per shape,
    not per call.
    """
    jh = np.arange(H, dtype=np.float64)
    jw = np.arange(W, dtype=np.float64)
    ah = (2.0 * np.pi / H) * np.outer(jh, jh)
    aw = (2.0 * np.pi / W) * np.outer(jw, jw)
    ch, sh = np.cos(ah), np.sin(ah)
    cw, sw = np.cos(aw), np.sin(aw)
    re = np.kron(ch, cw) - np.kron(sh, sw)
    im = -(np.kron(ch, sw) + np.kron(sh, cw))
    op = np.concatenate([re, im], axis=1)          # (H*W, 2*H*W)
    return jnp.asarray(op, dtype=dtype)


@functools.partial(jax.jit, static_argnames=("tile_rows", "matmul_dtype"))
def tiny_fft_phase(x, *, tile_rows=256, matmul_dtype=jnp.bfloat16):
    """Equivalent of TinyFFTLayer.forward: phase = angle(fft2(x)).  x: (B,C,H,W).

    Default path uses a bf16 operator + bf16 MXU inputs with f32 accumulation
    (recommended on all of v5e/v6e/v7x); pass matmul_dtype=jnp.float32 when
    exact phase of near-zero (cancelling) FFT bins matters.
    """
    B, C, H, W = x.shape
    M = B * C
    K = H * W

    xr = x.reshape(M, K).astype(jnp.float32)       # x stays f32 in HBM
    op = _dft2_operator(H, W, matmul_dtype)        # cached constant, bf16 by default

    # Row-tile the flattened batch dimension.  tile_rows=256 keeps blocks large
    # (>=128 KiB, step overhead amortized) while giving >=2 "parallel" steps for
    # bigger batches (shards across both v7x TensorCores, limits vreg spill in
    # the atan2 epilogue).  bf16 sublane packing wants multiples of 16 rows.
    row_align = 16 if np.dtype(matmul_dtype).itemsize < 4 else 8
    TB = _round_up(min(tile_rows, M), row_align)
    Mp = _round_up(M, TB)
    if Mp != M:
        xr = jnp.pad(xr, ((0, Mp - M), (0, 0)))

    # Explicit VMEM budget: double-buffered x/out tiles + double-buffered
    # constant operator, plus headroom.
    op_bytes = K * 2 * K * np.dtype(matmul_dtype).itemsize
    est_vmem = 2 * (TB * K * 4 + op_bytes + TB * K * 4) + (2 << 20)
    vmem_limit = int(min(max(est_vmem, 32 << 20), 120 << 20))
    # TODO(synk): for much larger H*W (operator ~2*(H*W)^2 bytes, mind v7x's
    # 64 MiB VMEM) single-buffer the operator (pipeline_mode=pl.Buffered(1))
    # and K-tile the matmul with a VMEM accumulator.

    out = pl.pallas_call(
        _fft2_phase_kernel,
        out_shape=jax.ShapeDtypeStruct((Mp, K), jnp.float32),
        grid=(Mp // TB,),
        in_specs=[
            pl.BlockSpec((TB, K), lambda i: (i, 0)),
            # Constant operator: block == full array, constant index_map, so it
            # is DMA'd into VMEM exactly once for the whole grid.
            pl.BlockSpec((K, 2 * K), lambda i: (0, 0)),
        ],
        out_specs=pl.BlockSpec((TB, K), lambda i: (i, 0)),
        compiler_params=pltpu.CompilerParams(
            dimension_semantics=("parallel",),
            vmem_limit_bytes=vmem_limit,
        ),
    )(xr, op)

    return out[:M].reshape(B, C, H, W)


if __name__ == "__main__":
    key = jax.random.PRNGKey(0)
    x = jax.random.normal(key, (2, 4, 16, 16), dtype=jnp.float32)

    # Default (bf16 operator / bf16 MXU inputs, f32 accumulation).
    phase_bf16 = tiny_fft_phase(x)
    jax.block_until_ready(phase_bf16)

    # Strict-accuracy path (f32 operator / f32 matmul).
    phase_f32 = tiny_fft_phase(x, matmul_dtype=jnp.float32)
    jax.block_until_ready(phase_f32)

    # Sanity check against XLA's fft2.  Compare unit phasors to sidestep the
    # +/-pi branch at (numerically) zero imaginary parts, and mask small
    # magnitudes whose phase is ill-conditioned (especially on the bf16 path,
    # where near-cancelling bins get perturbed phase — documented behaviour).
    xf = jnp.fft.fft2(x)
    ref = jnp.angle(xf)

    def max_phasor_err(phase, min_mag):
        mask = jnp.abs(xf) > min_mag
        return float(jnp.maximum(
            jnp.max(jnp.abs(jnp.where(mask, jnp.cos(phase) - jnp.cos(ref), 0.0))),
            jnp.max(jnp.abs(jnp.where(mask, jnp.sin(phase) - jnp.sin(ref), 0.0))),
        ))

    err_f32 = max_phasor_err(phase_f32, 0.5)
    assert err_f32 < 1e-2, f"f32 path: max phasor error too large: {err_f32}"

    err_bf16 = max_phasor_err(phase_bf16, 3.0)
    assert err_bf16 < 5e-2, f"bf16 path: max phasor error too large: {err_bf16}"

    print("KERNEL_OK")
</pallas_src>

<mosaic_0001>
module attributes {stable_mosaic.version = 11 : i64} {
  func.func @_fft2_phase_kernel(%arg0: i32, %arg1: memref<16x256xf32, #tpu.memory_space<vmem>>, %arg2: memref<256x512xbf16, #tpu.memory_space<vmem>>, %arg3: memref<16x256xf32, #tpu.memory_space<vmem>>) attributes {dimension_semantics = [#tpu.dimension_semantics<parallel>], iteration_bounds = array<i64: 1>, scalar_prefetch = 0 : i64, scratch_operands = 0 : i64, tpu.core_type = #tpu.core_type<tc>, window_params = [{transform_indices = @transform_0, window_bounds = array<i64: 16, 256>}, {pipeline_mode = #tpu.pipeline_mode<synchronous>, transform_indices = @transform_1, window_bounds = array<i64: 256, 512>}, {transform_indices = @transform_2, window_bounds = array<i64: 16, 256>}]} {
    %c0 = arith.constant 0 : index
    %c0_0 = arith.constant 0 : index
    %0 = vector.load %arg1[%c0, %c0_0] : memref<16x256xf32, #tpu.memory_space<vmem>>, vector<16x256xf32>
    %1 = arith.truncf %0 : vector<16x256xf32> to vector<16x256xbf16>
    %c0_1 = arith.constant 0 : index
    %c0_2 = arith.constant 0 : index
    %2 = vector.load %arg2[%c0_1, %c0_2] : memref<256x512xbf16, #tpu.memory_space<vmem>>, vector<256x512xbf16>
    %cst = arith.constant dense<0.000000e+00> : vector<16x512xf32>
    %3 = tpu.matmul %1, %2, %cst {dimension_numbers = #tpu.dot_dimension_numbers<[1], [0], [0], [1], [0, 0, 1, 1], [], []>} : vector<16x256xbf16>, vector<256x512xbf16>, vector<16x512xf32> -> vector<16x512xf32>
    %4 = vector.extract_strided_slice %3 {offsets = [0, 0], sizes = [16, 256], strides = [1, 1]} : vector<16x512xf32> to vector<16x256xf32>
    %5 = vector.extract_strided_slice %3 {offsets = [0, 256], sizes = [16, 256], strides = [1, 1]} : vector<16x512xf32> to vector<16x256xf32>
    %6 = math.absf %5 : vector<16x256xf32>
    %7 = math.absf %4 : vector<16x256xf32>
    %8 = arith.maximumf %6, %7 : vector<16x256xf32>
    %9 = arith.minimumf %6, %7 : vector<16x256xf32>
    %cst_3 = arith.constant 0.000000e+00 : f32
    %10 = vector.broadcast %cst_3 : f32 to vector<16x256xf32>
    %11 = arith.cmpf oeq, %8, %10 : vector<16x256xf32>
    %cst_4 = arith.constant 1.000000e+00 : f32
    %12 = vector.broadcast %cst_4 : f32 to vector<16x256xf32>
    %13 = arith.select %11, %12, %8 : vector<16x256xi1>, vector<16x256xf32>
    %14 = tpu.reciprocal %13 {approx = true} : vector<16x256xf32> -> vector<16x256xf32>
    %15 = arith.mulf %13, %14 : vector<16x256xf32>
    %cst_5 = arith.constant 2.000000e+00 : f32
    %16 = vector.broadcast %cst_5 : f32 to vector<16x256xf32>
    %17 = arith.subf %16, %15 : vector<16x256xf32>
    %18 = arith.mulf %14, %17 : vector<16x256xf32>
    %19 = arith.mulf %9, %18 : vector<16x256xf32>
    %20 = arith.mulf %19, %19 : vector<16x256xf32>
    %cst_6 = arith.constant 2.083510e-02 : f32
    %21 = vector.broadcast %cst_6 : f32 to vector<16x256xf32>
    %22 = arith.mulf %21, %20 : vector<16x256xf32>
    %cst_7 = arith.constant 8.513300e-02 : f32
    %23 = vector.broadcast %cst_7 : f32 to vector<16x256xf32>
    %24 = arith.subf %22, %23 : vector<16x256xf32>
    %25 = arith.mulf %24, %20 : vector<16x256xf32>
    %cst_8 = arith.constant 1.801410e-01 : f32
    %26 = vector.broadcast %cst_8 : f32 to vector<16x256xf32>
    %27 = arith.addf %25, %26 : vector<16x256xf32>
    %28 = arith.mulf %27, %20 : vector<16x256xf32>
    %cst_9 = arith.constant 0.330299497 : f32
    %29 = vector.broadcast %cst_9 : f32 to vector<16x256xf32>
    %30 = arith.subf %28, %29 : vector<16x256xf32>
    %31 = arith.mulf %30, %20 : vector<16x256xf32>
    %cst_10 = arith.constant 9.998660e-01 : f32
    %32 = vector.broadcast %cst_10 : f32 to vector<16x256xf32>
    %33 = arith.addf %31, %32 : vector<16x256xf32>
    %34 = arith.mulf %33, %19 : vector<16x256xf32>
    %35 = arith.cmpf ogt, %6, %7 : vector<16x256xf32>
    %cst_11 = arith.constant 1.57079637 : f32
    %36 = vector.broadcast %cst_11 : f32 to vector<16x256xf32>
    %37 = arith.subf %36, %34 : vector<16x256xf32>
    %38 = arith.select %35, %37, %34 : vector<16x256xi1>, vector<16x256xf32>
    %cst_12 = arith.constant 0.000000e+00 : f32
    %39 = vector.broadcast %cst_12 : f32 to vector<16x256xf32>
    %40 = arith.cmpf olt, %4, %39 : vector<16x256xf32>
    %cst_13 = arith.constant 3.14159274 : f32
    %41 = vector.broadcast %cst_13 : f32 to vector<16x256xf32>
    %42 = arith.subf %41, %38 : vector<16x256xf32>
    %43 = arith.select %40, %42, %38 : vector<16x256xi1>, vector<16x256xf32>
    %cst_14 = arith.constant 0.000000e+00 : f32
    %44 = vector.broadcast %cst_14 : f32 to vector<16x256xf32>
    %45 = arith.cmpf olt, %5, %44 : vector<16x256xf32>
    %cst_15 = arith.constant 0.000000e+00 : f32
    %46 = vector.broadcast %cst_15 : f32 to vector<16x256xf32>
    %47 = arith.subf %46, %43 : vector<16x256xf32>
    %48 = arith.select %45, %47, %43 : vector<16x256xi1>, vector<16x256xf32>
    %c0_16 = arith.constant 0 : index
    %c0_17 = arith.constant 0 : index
    %49 = vector.load %arg3[%c0_16, %c0_17] : memref<16x256xf32, #tpu.memory_space<vmem>>, vector<16x256xf32>
    tpu.vector_store %arg3[%c0_16, %c0_17], %48 {strides = array<i32>} : memref<16x256xf32, #tpu.memory_space<vmem>>, vector<16x256xf32>,
    return
  }
  func.func @transform_0(%arg0: i32) -> (i32, i32) {
    %c0_i32 = arith.constant 0 : i32
    %c0_i32_0 = arith.constant 0 : i32
    return %arg0, %c0_i32 : i32, i32
  }
  func.func @transform_1(%arg0: i32) -> (i32, i32) {
    %c0_i32 = arith.constant 0 : i32
    %c0_i32_0 = arith.constant 0 : i32
    %c0_i32_1 = arith.constant 0 : i32
    return %c0_i32, %c0_i32_0 : i32, i32
  }
  func.func @transform_2(%arg0: i32) -> (i32, i32) {
    %c0_i32 = arith.constant 0 : i32
    %c0_i32_0 = arith.constant 0 : i32
    return %arg0, %c0_i32 : i32, i32
  }
}

</mosaic_0001>

<bundles_post_ra>
// kernel: tiny_fft_phase.1
= control target key start
LH: loop header
LB: loop body
LE: loop exit
PB: predicated region body
PF: predicated region fallthrough
CT: control target
= control target key end

     0   :  { %7 = vsyncpa [#allocation3], 0  ;;  %s831_s9 = smov [#allocation2]   ;;  %s948_s0 = inlined_call_operand.vmem [shape: f32[16,256], index: 0, kind: input, shape index: {}]   ;;  %s949_s1 = inlined_call_operand.hbm [shape: bf16[256,512], index: 1, kind: input, shape index: {}]   ;;  %s950_s2 = inlined_call_operand.vmem [shape: f32[16,256], index: 2, kind: output, shape index: {}]  }
   0x1   :  { %s15_s10 = sshll.u32 %s831_s9, 4  ;;  %s16_s10 = int_to_ptr.vmem [resolvable:$true] %s15_s10 }
   0x2   :  { %s817_s11 = scalar_lea.vmem %s16_s10, 8192  ;;  %p822_p1 = scmp.lt.s32.totalorder %s16_s10, %s16_s10 }
   0x3   :  { %p818_p0 = scmp.ne.s32.totalorder %s16_s10, %s817_s11  ;;  %p823_p2 = scmp.lt.s32.totalorder %s817_s11, %s817_s11 }
   0x5   :  { %p824_p3 = por %p823_p2, %p822_p1 }
   0x7   :  { %p825_p4 = pnand %p824_p3, %p818_p0 }
   0x9   :  { %828 = shalt.err (!%p825_p4)
}
   0xa   :  { %s832_s12 = smov 256   ;;  %s833_s13 = smov 16  }
   0xb   :  { %21 = dma.hbm_to_vmem [thread:$0]  %s949_s1, 8192, %s16_s10, [#allocation3], %s832_s12, %s832_s12, %s833_s13  }
   0xc   :  { %829 = dma.done.wait [#allocation3], 8192  }
   0xd   :  { %830 = vsyncadd [#allocation3], 4294959104  ;;  %v705_v0 = vld [vmem:[#allocation2 + $0xe4] ss:$16 sps:$4 sm:$0xff]   ;;  %v707_v1 = vld [vmem:[#allocation2 + $0xec] ss:$16 sps:$4 sm:$0xff]  }
   0xe   :  { %415 = vmatprep.subr.bf16.mxu0 %v705_v0  ;;  %v709_v2 = vld [vmem:[#allocation2 + $0xe0] ss:$16 sps:$4 sm:$0xff]   ;;  %v710_v3 = vld [vmem:[#allocation2 + $0xe8] ss:$16 sps:$4 sm:$0xff]   ;;  %458 = vmatprep.subr.bf16.mxu1 %v707_v1  ;;  %v711_v4 = vld [vmem:[#allocation2 + $0xc4] ss:$16 sps:$4 sm:$0xff]  }
   0xf   :  { %416 = vmatpush1.bf16.msra.mxu0 %v709_v2  ;;  %459 = vmatpush1.bf16.msra.mxu1 %v710_v3  ;;  %v713_v5 = vld [vmem:[#allocation2 + $0xcc] ss:$16 sps:$4 sm:$0xff]   ;;  %v715_v6 = vld [vmem:[#allocation2 + $0xc0] ss:$16 sps:$4 sm:$0xff]   ;;  %v716_v7 = vld [vmem:[#allocation2 + $0xc8] ss:$16 sps:$4 sm:$0xff]  }
  0x10   :  { %417 = vmatprep.subr.bf16.mxu0 %v711_v4  ;;  %460 = vmatprep.subr.bf16.mxu1 %v713_v5  ;;  %v717_v8 = vld [vmem:[#allocation2 + $0xa4] ss:$16 sps:$4 sm:$0xff]   ;;  %v719_v9 = vld [vmem:[#allocation2 + $0xac] ss:$16 sps:$4 sm:$0xff]   ;;  %v721_v10 = vld [vmem:[#allocation2 + $0xa0] ss:$16 sps:$4 sm:$0xff]  }
  0x11   :  { %v722_v11 = vld [vmem:[#allocation2 + $0xa8] ss:$16 sps:$4 sm:$0xff]   ;;  %v723_v12 = vld [vmem:[#allocation2 + $0x84] ss:$16 sps:$4 sm:$0xff]   ;;  %v725_v13 = vld [vmem:[#allocation2 + $0x8c] ss:$16 sps:$4 sm:$0xff]  }
  0x12   :  { %v727_v14 = vld [vmem:[#allocation2 + $0x80] ss:$16 sps:$4 sm:$0xff]   ;;  %v728_v15 = vld [vmem:[#allocation2 + $0x88] ss:$16 sps:$4 sm:$0xff]   ;;  %v729_v16 = vld [vmem:[#allocation2 + $0x64] ss:$16 sps:$4 sm:$0xff]  }
  0x13   :  { %418 = vmatpush1.bf16.msra.mxu0 %v715_v6  ;;  %461 = vmatpush1.bf16.msra.mxu1 %v716_v7  ;;  %v731_v17 = vld [vmem:[#allocation2 + $0x6c] ss:$16 sps:$4 sm:$0xff]   ;;  %v733_v18 = vld [vmem:[#allocation2 + $0x60] ss:$16 sps:$4 sm:$0xff]   ;;  %v734_v19 = vld [vmem:[#allocation2 + $0x68] ss:$16 sps:$4 sm:$0xff]  }
  0x14   :  { %419 = vmatprep.subr.bf16.mxu0 %v717_v8  ;;  %462 = vmatprep.subr.bf16.mxu1 %v719_v9  ;;  %v735_v20 = vld [vmem:[#allocation2 + $0x44] ss:$16 sps:$4 sm:$0xff]   ;;  %v737_v21 = vld [vmem:[#allocation2 + $0x4c] ss:$16 sps:$4 sm:$0xff]   ;;  %v739_v22 = vld [vmem:[#allocation2 + $0x40] ss:$16 sps:$4 sm:$0xff]  }
  0x15   :  { %v740_v23 = vld [vmem:[#allocation2 + $0x48] ss:$16 sps:$4 sm:$0xff]   ;;  %v741_v24 = vld [vmem:[#allocation2 + $0x24] ss:$16 sps:$4 sm:$0xff]   ;;  %v743_v25 = vld [vmem:[#allocation2 + $0x2c] ss:$16 sps:$4 sm:$0xff]  }
  0x16   :  { %v745_v26 = vld [vmem:[#allocation2 + $0x20] ss:$16 sps:$4 sm:$0xff]   ;;  %v746_v27 = vld [vmem:[#allocation2 + $0x28] ss:$16 sps:$4 sm:$0xff]   ;;  %v747_v28 = vld [vmem:[#allocation2 + $0x4] ss:$16 sps:$4 sm:$0xff]  }
  0x17   :  { %420 = vmatpush1.bf16.msra.mxu0 %v721_v10  ;;  %463 = vmatpush1.bf16.msra.mxu1 %v722_v11  ;;  %v749_v29 = vld [vmem:[#allocation2 + $0xc] ss:$16 sps:$4 sm:$0xff]   ;;  %v751_v30 = vld [vmem:[#allocation2] ss:$16 sps:$4 sm:$0xff]   ;;  %v752_v31 = vld [vmem:[#allocation2 + $0x8] ss:$16 sps:$4 sm:$0xff]  }
  0x18   :  { %421 = vmatprep.subr.bf16.mxu0 %v723_v12  ;;  %464 = vmatprep.subr.bf16.mxu1 %v725_v13  ;;  %v753_v32 = vld [vmem:[#allocation2 + $0x1e4] ss:$16 sps:$4 sm:$0xff]   ;;  %v755_v33 = vld [vmem:[#allocation2 + $0x1ec] ss:$16 sps:$4 sm:$0xff]   ;;  %v757_v34 = vld [vmem:[#allocation2 + $0x1e0] ss:$16 sps:$4 sm:$0xff]  }
  0x19   :  { %v758_v35 = vld [vmem:[#allocation2 + $0x1e8] ss:$16 sps:$4 sm:$0xff]   ;;  %v759_v36 = vld [vmem:[#allocation2 + $0x1c4] ss:$16 sps:$4 sm:$0xff]   ;;  %v761_v37 = vld [vmem:[#allocation2 + $0x1cc] ss:$16 sps:$4 sm:$0xff]  }
  0x1a   :  { %v763_v38 = vld [vmem:[#allocation2 + $0x1c0] ss:$16 sps:$4 sm:$0xff]   ;;  %v764_v39 = vld [vmem:[#allocation2 + $0x1c8] ss:$16 sps:$4 sm:$0xff]   ;;  %v765_v40 = vld [vmem:[#allocation2 + $0x1a4] ss:$16 sps:$4 sm:$0xff]  }
  0x1b   :  { %422 = vmatpush1.bf16.msra.mxu0 %v727_v14  ;;  %465 = vmatpush1.bf16.msra.mxu1 %v728_v15  ;;  %v767_v41 = vld [vmem:[#allocation2 + $0x1ac] ss:$16 sps:$4 sm:$0xff]   ;;  %v769_v42 = vld [vmem:[#allocation2 + $0x1a0] ss:$16 sps:$4 sm:$0xff]   ;;  %v770_v43 = vld [vmem:[#allocation2 + $0x1a8] ss:$16 sps:$4 sm:$0xff]  }
  0x1c   :  { %423 = vmatprep.subr.bf16.mxu0 %v729_v16  ;;  %466 = vmatprep.subr.bf16.mxu1 %v731_v17  ;;  %v771_v44 = vld [vmem:[#allocation2 + $0x184] ss:$16 sps:$4 sm:$0xff]   ;;  %v773_v45 = vld [vmem:[#allocation2 + $0x18c] ss:$16 sps:$4 sm:$0xff]   ;;  %v775_v48 = vld [vmem:[#allocation2 + $0x180] ss:$16 sps:$4 sm:$0xff]  }
  0x1d   :  { %v26_v46 = vld [vmem:[%s948_s0 + $0x8] sm:$0xff]  ;;  %v28_v47 = vld [vmem:[%s948_s0 + $0x18] sm:$0xff]  ;;  %v777_v51 = vld [vmem:[#allocation2 + $0x164] ss:$16 sps:$4 sm:$0xff]  }
  0x1e   :  { %v776_v49 = vld [vmem:[#allocation2 + $0x188] ss:$16 sps:$4 sm:$0xff]   ;;  %v30_v50 = vpack.c.bf16 %v28_v47, %v26_v46  ;;  %v779_v52 = vld [vmem:[#allocation2 + $0x16c] ss:$16 sps:$4 sm:$0xff]   ;;  %v781_v53 = vld [vmem:[#allocation2 + $0x160] ss:$16 sps:$4 sm:$0xff]  }
  0x1f   :  { %424 = vmatpush1.bf16.msra.mxu0 %v733_v18  ;;  %467 = vmatpush1.bf16.msra.mxu1 %v734_v19  ;;  %v782_v54 = vld [vmem:[#allocation2 + $0x168] ss:$16 sps:$4 sm:$0xff]   ;;  %v783_v55 = vld [vmem:[#allocation2 + $0x144] ss:$16 sps:$4 sm:$0xff]   ;;  %v785_v56 = vld [vmem:[#allocation2 + $0x14c] ss:$16 sps:$4 sm:$0xff]  }
  0x20   :  { %425 = vmatprep.subr.bf16.mxu0 %v735_v20  ;;  %468 = vmatprep.subr.bf16.mxu1 %v737_v21  ;;  %v787_v57 = vld [vmem:[#allocation2 + $0x140] ss:$16 sps:$4 sm:$0xff]   ;;  %v788_v58 = vld [vmem:[#allocation2 + $0x148] ss:$16 sps:$4 sm:$0xff]   ;;  %v789_v59 = vld [vmem:[#allocation2 + $0x124] ss:$16 sps:$4 sm:$0xff]  }
  0x21   :  { %447 = vmatprep.mubr.bf16.mxu0 %v30_v50  ;;  %490 = vmatprep.mubr.bf16.mxu1 %v30_v50  ;;  %v791_v60 = vld [vmem:[#allocation2 + $0x12c] ss:$16 sps:$4 sm:$0xff]   ;;  %v793_v61 = vld [vmem:[#allocation2 + $0x120] ss:$16 sps:$4 sm:$0xff]   ;;  %v794_v62 = vld [vmem:[#allocation2 + $0x128] ss:$16 sps:$4 sm:$0xff]  }
  0x22   :  { %v795_v63 = vld [vmem:[#allocation2 + $0x104] ss:$16 sps:$4 sm:$0xff]   ;;  %v797_v0 = vld [vmem:[#allocation2 + $0x10c] ss:$16 sps:$4 sm:$0xff]   ;;  %v799_v1 = vld [vmem:[#allocation2 + $0x100] ss:$16 sps:$4 sm:$0xff]  }
  0x23   :  { %426 = vmatpush1.bf16.msra.mxu0 %v739_v22  ;;  %469 = vmatpush1.bf16.msra.mxu1 %v740_v23  ;;  %v800_v2 = vld [vmem:[#allocation2 + $0x108] ss:$16 sps:$4 sm:$0xff]   ;;  %v25_v3 = vld [vmem:[%s948_s0] sm:$0xff]  ;;  %v27_v4 = vld [vmem:[%s948_s0 + $0x10] sm:$0xff] }
  0x24   :  { %427 = vmatprep.subr.bf16.mxu0 %v741_v24  ;;  %470 = vmatprep.subr.bf16.mxu1 %v743_v25  ;;  %v29_v5 = vpack.c.bf16 %v27_v4, %v25_v3 }
  0x27   :  { %428 = vmatpush1.bf16.msra.mxu0 %v745_v26  ;;  %471 = vmatpush1.bf16.msra.mxu1 %v746_v27 }
  0x28   :  { %429 = vmatprep.subr.bf16.mxu0 %v747_v28  ;;  %472 = vmatprep.subr.bf16.mxu1 %v749_v29 }
  0x2b   :  { %430 = vmatpush1.bf16.msra.mxu0 %v751_v30  ;;  %473 = vmatpush1.bf16.msra.mxu1 %v752_v31 }
  0x2c   :  { %431 = vmatprep.subr.bf16.mxu0 %v753_v32  ;;  %474 = vmatprep.subr.bf16.mxu1 %v755_v33 }
  0x2f   :  { %432 = vmatpush2.bf16.msra.mxu0 %v757_v34  ;;  %475 = vmatpush2.bf16.msra.mxu1 %v758_v35 }
  0x30   :  { %433 = vmatprep.subr.bf16.mxu0 %v759_v36  ;;  %476 = vmatprep.subr.bf16.mxu1 %v761_v37 }
  0x33   :  { %434 = vmatpush2.bf16.msra.mxu0 %v763_v38  ;;  %477 = vmatpush2.bf16.msra.mxu1 %v764_v39 }
  0x34   :  { %435 = vmatprep.subr.bf16.mxu0 %v765_v40  ;;  %478 = vmatprep.subr.bf16.mxu1 %v767_v41 }
  0x37   :  { %436 = vmatpush2.bf16.msra.mxu0 %v769_v42  ;;  %479 = vmatpush2.bf16.msra.mxu1 %v770_v43 }
  0x38   :  { %437 = vmatprep.subr.bf16.mxu0 %v771_v44  ;;  %480 = vmatprep.subr.bf16.mxu1 %v773_v45 }
  0x3b   :  { %438 = vmatpush2.bf16.msra.mxu0 %v775_v48  ;;  %481 = vmatpush2.bf16.msra.mxu1 %v776_v49 }
  0x3c   :  { %439 = vmatprep.subr.bf16.mxu0 %v777_v51  ;;  %482 = vmatprep.subr.bf16.mxu1 %v779_v52 }
  0x3f   :  { %440 = vmatpush2.bf16.msra.mxu0 %v781_v53  ;;  %483 = vmatpush2.bf16.msra.mxu1 %v782_v54 }
  0x40   :  { %441 = vmatprep.subr.bf16.mxu0 %v783_v55  ;;  %484 = vmatprep.subr.bf16.mxu1 %v785_v56 }
  0x43   :  { %442 = vmatpush2.bf16.msra.mxu0 %v787_v57  ;;  %485 = vmatpush2.bf16.msra.mxu1 %v788_v58 }
  0x44   :  { %443 = vmatprep.subr.bf16.mxu0 %v789_v59  ;;  %486 = vmatprep.subr.bf16.mxu1 %v791_v60 }
  0x47   :  { %444 = vmatpush2.bf16.msra.mxu0 %v793_v61  ;;  %487 = vmatpush2.bf16.msra.mxu1 %v794_v62 }
  0x48   :  { %445 = vmatprep.subr.bf16.mxu0 %v795_v63  ;;  %488 = vmatprep.subr.bf16.mxu1 %v797_v0 }
  0x4b   :  { %446 = vmatpush2.bf16.msra.mxu0 %v799_v1  ;;  %489 = vmatpush2.bf16.msra.mxu1 %v800_v2 }
  0x4e   :  { %448 = vmatmul.mubr.bf16.vlgmr.msra.gmra.mxu0 %v29_v5  ;;  %491 = vmatmul.mubr.bf16.vlgmr.msra.gmra.mxu1 %v29_v5 }
 0x10e   :  { %v864_v6 = vpop.f32.mrf.mxu0  ;;  %v866_v7 = vpop.f32.mrf.mxu1 }
 0x10f   :  { %v869_v8 = vand.u32 2147483647, %v864_v6  ;;  %v872_v9 = vand.u32 2147483647, %v866_v7  ;;  %vm597_vm5 = vcmp.lt.f32.partialorder %v864_v6, 0.0  ;;  %vm609_vm8 = vcmp.lt.f32.partialorder %v866_v7, 0.0 }
 0x110   :  { %v874_v10 = vpop.f32.mrf.mxu0  ;;  %v876_v11 = vpop.f32.mrf.mxu1 }
 0x111   :  { %v509_v12 = vmax.f32 %v872_v9, %v869_v8  ;;  %v881_v13 = vand.u32 2147483647, %v874_v10  ;;  %v884_v14 = vand.u32 2147483647, %v876_v11  ;;  %v513_v36 = vmin.f32 %v872_v9, %v869_v8 }
 0x112   :  { %v886_v15 = vpop.f32.mrf.mxu0  ;;  %v888_v16 = vpop.f32.mrf.mxu1  ;;  %vm585_vm4 = vcmp.gt.f32.partialorder %v872_v9, %v869_v8  ;;  %vm598_vm9 = vcmp.lt.f32.partialorder %v874_v10, 0.0  ;;  %vm610_vm12 = vcmp.lt.f32.partialorder %v876_v11, 0.0 }
 0x113   :  { %vm517_vm0 = vcmp.eq.f32.partialorder %v509_v12, 0.0  ;;  %v891_v17 = vand.u32 2147483647, %v886_v15  ;;  %v894_v18 = vand.u32 2147483647, %v888_v16  ;;  %v510_v20 = vmax.f32 %v884_v14, %v881_v13 }
 0x114   :  { %v521_v19 = vsel %vm517_vm0, 1.0, %v509_v12  ;;  %v898_v21 = vpop.f32.mrf.mxu0  ;;  %v900_v22 = vpop.f32.mrf.mxu1  ;;  %v514_v43 = vmin.f32 %v884_v14, %v881_v13  ;;  %vm586_vm6 = vcmp.gt.f32.partialorder %v884_v14, %v881_v13  ;;  %vm599_vm10 = vcmp.lt.f32.partialorder %v886_v15, 0.0 }
 0x115   :  { %801 = vrcp.f32 %v521_v19  ;;  %v511_v23 = vmax.f32 %v894_v18, %v891_v17  ;;  %vm518_vm1 = vcmp.eq.f32.partialorder %v510_v20, 0.0  ;;  %v905_v24 = vand.u32 2147483647, %v898_v21 }
 0x116   :  { %v522_v25 = vsel %vm518_vm1, 1.0, %v510_v20  ;;  %v908_v26 = vand.u32 2147483647, %v900_v22  ;;  %v515_v46 = vmin.f32 %v894_v18, %v891_v17  ;;  %vm587_vm7 = vcmp.gt.f32.partialorder %v894_v18, %v891_v17 }
 0x117   :  { %vm519_vm2 = vcmp.eq.f32.partialorder %v511_v23, 0.0  ;;  %803 = vrcp.f32 %v522_v25  ;;  %vm611_vm13 = vcmp.lt.f32.partialorder %v888_v16, 0.0  ;;  %vm600_vm14 = vcmp.lt.f32.partialorder %v898_v21, 0.0 }
 0x118   :  { %v523_v27 = vsel %vm519_vm2, 1.0, %v511_v23  ;;  %v512_v28 = vmax.f32 %v908_v26, %v905_v24  ;;  %v516_v56 = vmin.f32 %v908_v26, %v905_v24  ;;  %vm588_vm11 = vcmp.gt.f32.partialorder %v908_v26, %v905_v24 }
 0x119   :  { %805 = vrcp.f32 %v523_v27  ;;  %vm612_vm15 = vcmp.lt.f32.partialorder %v900_v22, 0.0 }
 0x11a   :  { %vm520_vm3 = vcmp.eq.f32.partialorder %v512_v28, 0.0 }
 0x11b   :  { %v524_v29 = vsel %vm520_vm3, 1.0, %v512_v28 }
 0x11c   :  { %807 = vrcp.f32 %v524_v29 }
 0x122   :  { %v802_v30 = vpop.eup %801 }
 0x123   :  { %v529_v31 = vmul.f32 %v802_v30, %v521_v19 }
 0x124   :  { %v804_v32 = vpop.eup %803 }
 0x125   :  { %v533_v33 = vsub.f32 2.0, %v529_v31  ;;  %v530_v35 = vmul.f32 %v804_v32, %v522_v25 }
 0x126   :  { %v806_v34 = vpop.eup %805 }
 0x127   :  { %v537_v37 = vmul.f32 %v802_v30, %v533_v33  ;;  %v531_v38 = vmul.f32 %v806_v34, %v523_v27  ;;  %v534_v39 = vsub.f32 2.0, %v530_v35 }
 0x129   :  { %v541_v40 = vmul.f32 %v537_v37, %v513_v36  ;;  %v535_v41 = vsub.f32 2.0, %v531_v38  ;;  %v808_v42 = vpop.eup %807  ;;  %v538_v44 = vmul.f32 %v804_v32, %v534_v39 }
 0x12a   :  { %v532_v48 = vmul.f32 %v808_v42, %v524_v29 }
 0x12b   :  { %v545_v45 = vmul.f32 %v541_v40, %v541_v40  ;;  %v539_v47 = vmul.f32 %v806_v34, %v535_v41  ;;  %v542_v49 = vmul.f32 %v538_v44, %v514_v43 }
 0x12c   :  { %v536_v52 = vsub.f32 2.0, %v532_v48 }
 0x12d   :  { %v549_v50 = vmul.f32 0.0208351, %v545_v45  ;;  %v543_v51 = vmul.f32 %v539_v47, %v515_v46  ;;  %v546_v53 = vmul.f32 %v542_v49, %v542_v49 }
 0x12e   :  { %v540_v57 = vmul.f32 %v808_v42, %v536_v52 }
 0x12f   :  { %v694_v54 = vadd.f32 -0.085133, %v549_v50  ;;  %v547_v55 = vmul.f32 %v543_v51, %v543_v51  ;;  %v550_v58 = vmul.f32 0.0208351, %v546_v53 }
 0x130   :  { %v544_v61 = vmul.f32 %v540_v57, %v516_v56 }
 0x131   :  { %v557_v59 = vmul.f32 %v694_v54, %v545_v45  ;;  %v551_v60 = vmul.f32 0.0208351, %v547_v55  ;;  %v695_v62 = vadd.f32 -0.085133, %v550_v58 }
 0x132   :  { %v548_v1 = vmul.f32 %v544_v61, %v544_v61 }
 0x133   :  { %v561_v63 = vadd.f32 0.180141, %v557_v59  ;;  %v696_v0 = vadd.f32 -0.085133, %v551_v60  ;;  %v558_v2 = vmul.f32 %v695_v62, %v546_v53 }
 0x134   :  { %v552_v5 = vmul.f32 0.0208351, %v548_v1 }
 0x135   :  { %v565_v3 = vmul.f32 %v561_v63, %v545_v45  ;;  %v559_v4 = vmul.f32 %v696_v0, %v547_v55  ;;  %v562_v12 = vadd.f32 0.180141, %v558_v2 }
 0x136   :  { %v697_v23 = vadd.f32 -0.085133, %v552_v5 }
 0x137   :  { %v698_v19 = vadd.f32 -0.3302995, %v565_v3  ;;  %v563_v20 = vadd.f32 0.180141, %v559_v4  ;;  %v566_v25 = vmul.f32 %v562_v12, %v546_v53 }
 0x138   :  { %v560_v29 = vmul.f32 %v697_v23, %v548_v1 }
 0x139   :  { %v573_v27 = vmul.f32 %v698_v19, %v545_v45  ;;  %v567_v28 = vmul.f32 %v563_v20, %v547_v55  ;;  %v699_v30 = vadd.f32 -0.3302995, %v566_v25 }
 0x13a   :  { %v564_v33 = vadd.f32 0.180141, %v560_v29 }
 0x13b   :  { %v577_v31 = vadd.f32 0.999866, %v573_v27  ;;  %v700_v32 = vadd.f32 -0.3302995, %v567_v28  ;;  %v574_v34 = vmul.f32 %v699_v30, %v546_v53 }
 0x13c   :  { %v568_v37 = vmul.f32 %v564_v33, %v548_v1 }
 0x13d   :  { %v581_v35 = vmul.f32 %v577_v31, %v541_v40  ;;  %v575_v36 = vmul.f32 %v700_v32, %v547_v55  ;;  %v578_v38 = vadd.f32 0.999866, %v574_v34 }
 0x13e   :  { %v701_v42 = vadd.f32 -0.3302995, %v568_v37 }
 0x13f   :  { %v589_v39 = vsub.f32 1.5707964, %v581_v35  ;;  %v579_v41 = vadd.f32 0.999866, %v575_v36  ;;  %v582_v43 = vmul.f32 %v578_v38, %v542_v49 }
 0x140   :  { %v576_v46 = vmul.f32 %v701_v42, %v548_v1 }
 0x141   :  { %v593_v44 = vsel %vm585_vm4, %v589_v39, %v581_v35  ;;  %v583_v45 = vmul.f32 %v579_v41, %v543_v51  ;;  %v590_v48 = vsub.f32 1.5707964, %v582_v43 }
 0x142   :  { %v601_v47 = vsub.f32 3.1415927, %v593_v44  ;;  %v580_v50 = vadd.f32 0.999866, %v576_v46 }
 0x143   :  { %v591_v40 = vsub.f32 1.5707964, %v583_v45  ;;  %v594_v53 = vsel %vm586_vm6, %v590_v48, %v582_v43 }
 0x144   :  { %v605_v52 = vsel %vm597_vm5, %v601_v47, %v593_v44  ;;  %v602_v8 = vsub.f32 3.1415927, %v594_v53  ;;  %v584_v49 = vmul.f32 %v580_v50, %v544_v61 }
 0x145   :  { %v613_v54 = vsub.f32 0.0, %v605_v52  ;;  %v595_v9 = vsel %vm587_vm7, %v591_v40, %v583_v45 }
 0x146   :  { %v603_v51 = vsub.f32 3.1415927, %v595_v9  ;;  %v606_v55 = vsel %vm598_vm9, %v602_v8, %v594_v53  ;;  %v592_v13 = vsub.f32 1.5707964, %v584_v49 }
 0x147   :  { %v617_v6 = vsel %vm609_vm8, %v613_v54, %v605_v52  ;;  %v614_v14 = vsub.f32 0.0, %v606_v55 }
 0x148   :  { %621 = vst [vmem:[%s950_s2] sm:$0xff] %v617_v6  ;;  %v607_v17 = vsel %vm599_vm10, %v603_v51, %v595_v9  ;;  %v596_v18 = vsel %vm588_vm11, %v592_v13, %v584_v49 }
 0x149   :  { %v615_v7 = vsub.f32 0.0, %v607_v17  ;;  %v618_v10 = vsel %vm610_vm12, %v614_v14, %v606_v55  ;;  %v604_v56 = vsub.f32 3.1415927, %v596_v18 }
 0x14a   :  { %622 = vst [vmem:[%s950_s2 + $0x8] sm:$0xff] %v618_v10 }
 0x14b   :  { %v619_v15 = vsel %vm611_vm13, %v615_v7, %v607_v17  ;;  %v608_v24 = vsel %vm600_vm14, %v604_v56, %v596_v18 }
 0x14c   :  { %623 = vst [vmem:[%s950_s2 + $0x10] sm:$0xff] %v619_v15  ;;  %v616_v26 = vsub.f32 0.0, %v608_v24 }
 0x14e   :  { %v620_v11 = vsel %vm612_vm15, %v616_v26, %v608_v24 }
 0x14f   :  { %624 = vst [vmem:[%s950_s2 + $0x18] sm:$0xff] %v620_v11 }
 0x150   :  { %629 = vsyncpa [#allocation3], 1 }

</bundles_post_ra>
